<compile_context>
chip_gen: v7x
topology: tpu7x:2x2x1
jax: 0.10.0
libtpu: 0.0.40
codegen_flags: <defaults>
</compile_context>

<pallas_src>
import functools

import jax
import jax.numpy as jnp
import numpy as np
from jax.experimental import pallas as pl
from jax.experimental.pallas import tpu as pltpu

# ---- small, lane-friendly config (module defaults are 512/2048; scaled down) ----
MODEL_DIM = 128      # multiple of 128 -> lane-dense outputs
FFN_DIM = 256        # multiple of 128
LN_EPS = 1e-5


# ------------------------------------------------------------------ fused kernel

def _ffn_fused_kernel(x_ref, w1t_ref, b1_ref, w2t_ref, b2_ref, g_ref, beta_ref,
                      o_ref, *, eps):
    """One row-block of the positionwise FFN, fully fused.

    x:   [TM, D] f32   w1t: [D, F] bf16   b1: [1, F] f32
    w2t: [F, D] bf16   b2:  [1, D] f32    g/beta: [1, D] f32
    out: [TM, D] f32
    """
    x = x_ref[...]                                   # f32, kept for residual

    # Conv1d(D->F, k=1) == x @ W1^T ; ReLU.  bf16 operands, f32 accumulation.
    h = jnp.dot(x.astype(jnp.bfloat16), w1t_ref[...],
                preferred_element_type=jnp.float32) + b1_ref[...]
    h = jnp.maximum(h, 0.0)

    # Conv1d(F->D, k=1) == h @ W2^T ; dropout(p=0) is identity.
    y = jnp.dot(h.astype(jnp.bfloat16), w2t_ref[...],
                preferred_element_type=jnp.float32) + b2_ref[...]

    # Residual add + LayerNorm over the feature dim (all f32).
    y = x + y
    d = y.shape[-1]
    # One cross-lane pass: sum and sum-of-squares together.
    s = jnp.sum(y, axis=-1, keepdims=True)
    s2 = jnp.sum(y * y, axis=-1, keepdims=True)
    mu = s * (1.0 / d)
    var = jnp.maximum(s2 * (1.0 / d) - mu * mu, 0.0)
    inv = jax.lax.rsqrt(var + eps)
    o_ref[...] = (y - mu) * inv * g_ref[...] + beta_ref[...]


def _choose_tm(M):
    """Largest lane/sublane-friendly row tile that keeps >=2 grid steps."""
    for tm in (512, 256, 128):
        if M >= 2 * tm:
            return tm
    # Small M: single tile, padded up to a sublane multiple (8).
    return max(8, ((M + 7) // 8) * 8)


def positionwise_feed_forward(x, params):
    """x: [B, L, D] float32 -> [B, L, D] float32 (one fused pallas_call)."""
    B, L, D = x.shape
    F = params["w1t"].shape[1]
    M = B * L
    x2d = x.reshape(M, D)

    TM = _choose_tm(M)
    M_pad = pl.cdiv(M, TM) * TM
    if M_pad != M:
        # Pad rows instead of falling back to one huge block (keeps VMEM bounded
        # and keeps the pipelined path for all shapes).
        x2d = jnp.pad(x2d, ((0, M_pad - M), (0, 0)))
    grid = (M_pad // TM,)

    cost = pl.CostEstimate(
        flops=2 * M_pad * D * F * 2,                       # two matmuls
        transcendentals=M_pad,                             # rsqrt per row
        bytes_accessed=4 * M_pad * D * 2 + 2 * (D * F + F * D),
    )

    out2d = pl.pallas_call(
        functools.partial(_ffn_fused_kernel, eps=LN_EPS),
        grid=grid,
        in_specs=[
            pl.BlockSpec((TM, D), lambda i: (i, 0)),   # x row block (f32)
            pl.BlockSpec((D, F), lambda i: (0, 0)),    # W1^T (bf16, resident)
            pl.BlockSpec((1, F), lambda i: (0, 0)),    # b1
            pl.BlockSpec((F, D), lambda i: (0, 0)),    # W2^T (bf16, resident)
            pl.BlockSpec((1, D), lambda i: (0, 0)),    # b2
            pl.BlockSpec((1, D), lambda i: (0, 0)),    # gamma
            pl.BlockSpec((1, D), lambda i: (0, 0)),    # beta
        ],
        out_specs=pl.BlockSpec((TM, D), lambda i: (i, 0)),
        out_shape=jax.ShapeDtypeStruct((M_pad, D), jnp.float32),
        cost_estimate=cost,
        compiler_params=pltpu.CompilerParams(
            dimension_semantics=("parallel",)),
    )(x2d, params["w1t"], params["b1"], params["w2t"], params["b2"],
      params["gamma"], params["beta"])

    return out2d[:M].reshape(B, L, D)


# ------------------------------------------------------------------ parameters

def init_params(key, model_dim=MODEL_DIM, ffn_dim=FFN_DIM):
    """PyTorch-layout params: Conv1d weights [out, in, 1], biases [out]."""
    k1, k2, k3, k4 = jax.random.split(key, 4)
    std1 = float(np.sqrt(1.0 / model_dim))
    std2 = float(np.sqrt(1.0 / ffn_dim))
    return dict(
        w1=std1 * jax.random.normal(k1, (ffn_dim, model_dim, 1), jnp.float32),
        b1=std1 * jax.random.normal(k2, (ffn_dim,), jnp.float32),
        w2=std2 * jax.random.normal(k3, (model_dim, ffn_dim, 1), jnp.float32),
        b2=std2 * jax.random.normal(k4, (model_dim,), jnp.float32),
        gamma=jnp.ones((model_dim,), jnp.float32),
        beta=jnp.zeros((model_dim,), jnp.float32),
    )


def prepare_params(p):
    """One-time layout prep: transpose weights for x @ W^T (bf16), 2-D bias/LN."""
    F, D = p["w1"].shape[0], p["w1"].shape[1]
    return dict(
        w1t=jnp.transpose(p["w1"][:, :, 0]).astype(jnp.bfloat16),   # [D, F]
        b1=p["b1"].reshape(1, F).astype(jnp.float32),
        w2t=jnp.transpose(p["w2"][:, :, 0]).astype(jnp.bfloat16),   # [F, D]
        b2=p["b2"].reshape(1, D).astype(jnp.float32),
        gamma=p["gamma"].reshape(1, D).astype(jnp.float32),
        beta=p["beta"].reshape(1, D).astype(jnp.float32),
    )


# ------------------------------------------------------------------ pure-JAX reference

def reference_forward(x, p, eps=LN_EPS):
    B, L, D = x.shape
    x2d = x.reshape(B * L, D)
    h = jnp.maximum(x2d @ p["w1"][:, :, 0].T + p["b1"], 0.0)
    y = h @ p["w2"][:, :, 0].T + p["b2"]
    y = x2d + y
    mu = jnp.mean(y, axis=-1, keepdims=True)
    var = jnp.mean(jnp.square(y - mu), axis=-1, keepdims=True)
    out = (y - mu) / jnp.sqrt(var + eps) * p["gamma"] + p["beta"]
    return out.reshape(B, L, D)


# ------------------------------------------------------------------ main

if __name__ == "__main__":
    key = jax.random.PRNGKey(0)
    kp, kx1, kx2 = jax.random.split(key, 3)

    params_pt = init_params(kp)              # PyTorch layout (f32)
    params = prepare_params(params_pt)       # kernel layout (bf16 weights)

    # Case 1: tiny input (single padded tile, grid=1).
    x1 = jax.random.normal(kx1, (2, 8, MODEL_DIM), jnp.float32)
    out1 = jax.block_until_ready(positionwise_feed_forward(x1, params))
    assert out1.shape == x1.shape
    assert bool(jnp.all(jnp.isfinite(out1)))
    ref1 = jax.block_until_ready(reference_forward(x1, params_pt))
    # bf16 matmul operands vs f32 reference -> slightly relaxed tolerance.
    np.testing.assert_allclose(np.asarray(out1), np.asarray(ref1),
                               rtol=2e-2, atol=2e-2)

    # Case 2: ragged M (exercises row padding + multi-block parallel grid).
    x2 = jax.random.normal(kx2, (3, 100, MODEL_DIM), jnp.float32)
    out2 = jax.block_until_ready(positionwise_feed_forward(x2, params))
    assert out2.shape == x2.shape
    assert bool(jnp.all(jnp.isfinite(out2)))
    ref2 = jax.block_until_ready(reference_forward(x2, params_pt))
    np.testing.assert_allclose(np.asarray(out2), np.asarray(ref2),
                               rtol=2e-2, atol=2e-2)

    print("KERNEL_OK")
</pallas_src>

<mosaic_0001>
module attributes {stable_mosaic.version = 11 : i64} {
  func.func @_ffn_fused_kernel(%arg0: i32, %arg1: memref<16x128xf32, #tpu.memory_space<vmem>>, %arg2: memref<128x256xbf16, #tpu.memory_space<vmem>>, %arg3: memref<1x256xf32, #tpu.memory_space<vmem>>, %arg4: memref<256x128xbf16, #tpu.memory_space<vmem>>, %arg5: memref<1x128xf32, #tpu.memory_space<vmem>>, %arg6: memref<1x128xf32, #tpu.memory_space<vmem>>, %arg7: memref<1x128xf32, #tpu.memory_space<vmem>>, %arg8: memref<16x128xf32, #tpu.memory_space<vmem>>) attributes {dimension_semantics = [#tpu.dimension_semantics<parallel>], iteration_bounds = array<i64: 1>, scalar_prefetch = 0 : i64, scratch_operands = 0 : i64, tpu.core_type = #tpu.core_type<tc>, window_params = [{transform_indices = @transform_0, window_bounds = array<i64: 16, 128>}, {pipeline_mode = #tpu.pipeline_mode<synchronous>, transform_indices = @transform_1, window_bounds = array<i64: 128, 256>}, {pipeline_mode = #tpu.pipeline_mode<synchronous>, transform_indices = @transform_2, window_bounds = array<i64: 1, 256>}, {pipeline_mode = #tpu.pipeline_mode<synchronous>, transform_indices = @transform_3, window_bounds = array<i64: 256, 128>}, {pipeline_mode = #tpu.pipeline_mode<synchronous>, transform_indices = @transform_4, window_bounds = array<i64: 1, 128>}, {pipeline_mode = #tpu.pipeline_mode<synchronous>, transform_indices = @transform_5, window_bounds = array<i64: 1, 128>}, {pipeline_mode = #tpu.pipeline_mode<synchronous>, transform_indices = @transform_6, window_bounds = array<i64: 1, 128>}, {transform_indices = @transform_7, window_bounds = array<i64: 16, 128>}]} {
    %c0 = arith.constant 0 : index
    %c0_0 = arith.constant 0 : index
    %0 = vector.load %arg1[%c0, %c0_0] : memref<16x128xf32, #tpu.memory_space<vmem>>, vector<16x128xf32>
    %1 = arith.truncf %0 : vector<16x128xf32> to vector<16x128xbf16>
    %c0_1 = arith.constant 0 : index
    %c0_2 = arith.constant 0 : index
    %2 = vector.load %arg2[%c0_1, %c0_2] : memref<128x256xbf16, #tpu.memory_space<vmem>>, vector<128x256xbf16>
    %cst = arith.constant dense<0.000000e+00> : vector<16x256xf32>
    %3 = tpu.matmul %1, %2, %cst {dimension_numbers = #tpu.dot_dimension_numbers<[1], [0], [0], [1], [0, 0, 1, 1], [], []>} : vector<16x128xbf16>, vector<128x256xbf16>, vector<16x256xf32> -> vector<16x256xf32>
    %c0_3 = arith.constant 0 : index
    %c0_4 = arith.constant 0 : index
    %4 = vector.load %arg3[%c0_3, %c0_4] : memref<1x256xf32, #tpu.memory_space<vmem>>, vector<1x256xf32>
    %5 = vector.broadcast %4 : vector<1x256xf32> to vector<16x256xf32>
    %6 = arith.addf %3, %5 : vector<16x256xf32>
    %cst_5 = arith.constant 0.000000e+00 : f32
    %7 = vector.broadcast %cst_5 : f32 to vector<16x256xf32>
    %8 = arith.maximumf %6, %7 : vector<16x256xf32>
    %9 = arith.truncf %8 : vector<16x256xf32> to vector<16x256xbf16>
    %c0_6 = arith.constant 0 : index
    %c0_7 = arith.constant 0 : index
    %10 = vector.load %arg4[%c0_6, %c0_7] : memref<256x128xbf16, #tpu.memory_space<vmem>>, vector<256x128xbf16>
    %cst_8 = arith.constant dense<0.000000e+00> : vector<16x128xf32>
    %11 = tpu.matmul %9, %10, %cst_8 {dimension_numbers = #tpu.dot_dimension_numbers<[1], [0], [0], [1], [0, 0, 1, 1], [], []>} : vector<16x256xbf16>, vector<256x128xbf16>, vector<16x128xf32> -> vector<16x128xf32>
    %c0_9 = arith.constant 0 : index
    %c0_10 = arith.constant 0 : index
    %12 = vector.load %arg5[%c0_9, %c0_10] : memref<1x128xf32, #tpu.memory_space<vmem>>, vector<1x128xf32>
    %13 = vector.broadcast %12 : vector<1x128xf32> to vector<16x128xf32>
    %14 = arith.addf %11, %13 : vector<16x128xf32>
    %15 = arith.addf %0, %14 : vector<16x128xf32>
    %cst_11 = arith.constant dense<0.000000e+00> : vector<16xf32>
    %16 = vector.multi_reduction <add>, %15, %cst_11 [1] : vector<16x128xf32> to vector<16xf32>
    %17 = vector.shape_cast %16 : vector<16xf32> to vector<16x1xf32>
    %18 = arith.mulf %15, %15 : vector<16x128xf32>
    %cst_12 = arith.constant dense<0.000000e+00> : vector<16xf32>
    %19 = vector.multi_reduction <add>, %18, %cst_12 [1] : vector<16x128xf32> to vector<16xf32>
    %20 = vector.shape_cast %19 : vector<16xf32> to vector<16x1xf32>
    %cst_13 = arith.constant 7.812500e-03 : f32
    %21 = vector.broadcast %cst_13 : f32 to vector<16x1xf32>
    %22 = arith.mulf %17, %21 : vector<16x1xf32>
    %cst_14 = arith.constant 7.812500e-03 : f32
    %23 = vector.broadcast %cst_14 : f32 to vector<16x1xf32>
    %24 = arith.mulf %20, %23 : vector<16x1xf32>
    %25 = arith.mulf %22, %22 : vector<16x1xf32>
    %26 = arith.subf %24, %25 : vector<16x1xf32>
    %cst_15 = arith.constant 0.000000e+00 : f32
    %27 = vector.broadcast %cst_15 : f32 to vector<16x1xf32>
    %28 = arith.maximumf %26, %27 : vector<16x1xf32>
    %cst_16 = arith.constant 9.99999974E-6 : f32
    %29 = vector.broadcast %cst_16 : f32 to vector<16x1xf32>
    %30 = arith.addf %28, %29 : vector<16x1xf32>
    %31 = math.rsqrt %30 : vector<16x1xf32>
    %32 = vector.broadcast %22 : vector<16x1xf32> to vector<16x128xf32>
    %33 = arith.subf %15, %32 : vector<16x128xf32>
    %34 = vector.broadcast %31 : vector<16x1xf32> to vector<16x128xf32>
    %35 = arith.mulf %33, %34 : vector<16x128xf32>
    %c0_17 = arith.constant 0 : index
    %c0_18 = arith.constant 0 : index
    %36 = vector.load %arg6[%c0_17, %c0_18] : memref<1x128xf32, #tpu.memory_space<vmem>>, vector<1x128xf32>
    %37 = vector.broadcast %36 : vector<1x128xf32> to vector<16x128xf32>
    %38 = arith.mulf %35, %37 : vector<16x128xf32>
    %c0_19 = arith.constant 0 : index
    %c0_20 = arith.constant 0 : index
    %39 = vector.load %arg7[%c0_19, %c0_20] : memref<1x128xf32, #tpu.memory_space<vmem>>, vector<1x128xf32>
    %40 = vector.broadcast %39 : vector<1x128xf32> to vector<16x128xf32>
    %41 = arith.addf %38, %40 : vector<16x128xf32>
    %c0_21 = arith.constant 0 : index
    %c0_22 = arith.constant 0 : index
    %42 = vector.load %arg8[%c0_21, %c0_22] : memref<16x128xf32, #tpu.memory_space<vmem>>, vector<16x128xf32>
    tpu.vector_store %arg8[%c0_21, %c0_22], %41 {strides = array<i32>} : memref<16x128xf32, #tpu.memory_space<vmem>>, vector<16x128xf32>,
    return
  }
  func.func @transform_0(%arg0: i32) -> (i32, i32) {
    %c0_i32 = arith.constant 0 : i32
    %c0_i32_0 = arith.constant 0 : i32
    return %arg0, %c0_i32 : i32, i32
  }
  func.func @transform_1(%arg0: i32) -> (i32, i32) {
    %c0_i32 = arith.constant 0 : i32
    %c0_i32_0 = arith.constant 0 : i32
    %c0_i32_1 = arith.constant 0 : i32
    return %c0_i32, %c0_i32_0 : i32, i32
  }
  func.func @transform_2(%arg0: i32) -> (i32, i32) {
    %c0_i32 = arith.constant 0 : i32
    %c0_i32_0 = arith.constant 0 : i32
    %c0_i32_1 = arith.constant 0 : i32
    return %c0_i32, %c0_i32_0 : i32, i32
  }
  func.func @transform_3(%arg0: i32) -> (i32, i32) {
    %c0_i32 = arith.constant 0 : i32
    %c0_i32_0 = arith.constant 0 : i32
    %c0_i32_1 = arith.constant 0 : i32
    return %c0_i32, %c0_i32_0 : i32, i32
  }
  func.func @transform_4(%arg0: i32) -> (i32, i32) {
    %c0_i32 = arith.constant 0 : i32
    %c0_i32_0 = arith.constant 0 : i32
    %c0_i32_1 = arith.constant 0 : i32
    return %c0_i32, %c0_i32_0 : i32, i32
  }
  func.func @transform_5(%arg0: i32) -> (i32, i32) {
    %c0_i32 = arith.constant 0 : i32
    %c0_i32_0 = arith.constant 0 : i32
    %c0_i32_1 = arith.constant 0 : i32
    return %c0_i32, %c0_i32_0 : i32, i32
  }
  func.func @transform_6(%arg0: i32) -> (i32, i32) {
    %c0_i32 = arith.constant 0 : i32
    %c0_i32_0 = arith.constant 0 : i32
    %c0_i32_1 = arith.constant 0 : i32
    return %c0_i32, %c0_i32_0 : i32, i32
  }
  func.func @transform_7(%arg0: i32) -> (i32, i32) {
    %c0_i32 = arith.constant 0 : i32
    %c0_i32_0 = arith.constant 0 : i32
    return %arg0, %c0_i32 : i32, i32
  }
}

</mosaic_0001>

<bundles_post_ra>
// kernel: tpu_custom_call.1
= control target key start
LH: loop header
LB: loop body
LE: loop exit
PB: predicated region body
PF: predicated region fallthrough
CT: control target
= control target key end

     0   :  { %12 = vsyncpa [#allocation3], 0  ;;  %s802_s0 = inlined_call_operand.hbm [shape: f32[16,128], index: 0, kind: input, shape index: {}]   ;;  %s803_s1 = inlined_call_operand.hbm [shape: bf16[128,256], index: 1, kind: input, shape index: {}]   ;;  %s804_s2 = inlined_call_operand.vmem [shape: f32[1,256], index: 2, kind: input, shape index: {}]   ;;  %s805_s3 = inlined_call_operand.hbm [shape: bf16[256,128], index: 3, kind: input, shape index: {}]   ;;  %s806_s4 = inlined_call_operand.vmem [shape: f32[1,128], index: 4, kind: input, shape index: {}]   ;;  %s807_s5 = inlined_call_operand.vmem [shape: f32[1,128], index: 5, kind: input, shape index: {}]   ;;  %s808_s6 = inlined_call_operand.vmem [shape: f32[1,128], index: 6, kind: input, shape index: {}]   ;;  %s809_s7 = inlined_call_operand.hbm [shape: f32[16,128], index: 7, kind: output, shape index: {}]  }
   0x1   :  { %13 = vsyncpa [#allocation6], 0 }
   0x2   :  { %14 = vsyncpa [#allocation4], 0  ;;  %s677_s24 = smov [#allocation5]   ;;  %s678_s26 = smov [#allocation2]  }
   0x3   :  { %s32_s25 = sshll.u32 %s677_s24, 4  ;;  %s20_s27 = sshll.u32 %s678_s26, 4  ;;  %s33_s25 = int_to_ptr.vmem [resolvable:$true] %s32_s25  ;;  %s726_s27 = int_to_ptr.vmem [resolvable:$true] %s20_s27 }
   0x4   :  { %s583_s30 = scalar_lea.hbm %s803_s1, 2048 }
   0x5   :  { %p584_p0 = scmp.ne.s32.totalorder %s803_s1, %s583_s30  ;;  %p587_p1 = scmp.lt.u32.totalorder %s583_s30, %s803_s1 }
   0x7   :  { %p589_p2 = pnand %p587_p1, %p584_p0 }
   0x9   :  { %592 = shalt.err (!%p589_p2)
}
   0xa   :  { %s593_s12 = scalar_lea.vmem %s33_s25, 2048  ;;  %p598_p4 = scmp.lt.s32.totalorder %s33_s25, %s33_s25 }
   0xb   :  { %p594_p3 = scmp.ne.s32.totalorder %s33_s25, %s593_s12  ;;  %p599_p5 = scmp.lt.s32.totalorder %s593_s12, %s593_s12 }
   0xd   :  { %p600_p6 = por %p599_p5, %p598_p4 }
   0xf   :  { %p601_p7 = pnand %p600_p6, %p594_p3 }
  0x11   :  { %604 = shalt.err (!%p601_p7)
}
  0x12   :  { %s679_s13 = smov 128   ;;  %s680_s14 = smov 8  }
  0x13   :  { %38 = dma.hbm_to_vmem [thread:$0]  %s803_s1, 2048, %s33_s25, [#allocation6], %s679_s13, %s679_s13, %s680_s14  }
  0x14   :  { %s605_s19 = scalar_lea.hbm %s802_s0, 256 }
  0x15   :  { %p606_p8 = scmp.ne.s32.totalorder %s802_s0, %s605_s19  ;;  %p609_p9 = scmp.lt.u32.totalorder %s605_s19, %s802_s0 }
  0x17   :  { %p611_p10 = pnand %p609_p9, %p606_p8 }
  0x19   :  { %614 = shalt.err (!%p611_p10)
}
  0x1a   :  { %s615_s24 = scalar_lea.vmem %s726_s27, 256  ;;  %p620_p12 = scmp.lt.s32.totalorder %s726_s27, %s726_s27 }
  0x1b   :  { %p616_p11 = scmp.ne.s32.totalorder %s726_s27, %s615_s24  ;;  %p621_p13 = scmp.lt.s32.totalorder %s615_s24, %s615_s24 }
  0x1d   :  { %p622_p0 = por %p621_p13, %p620_p12 }
  0x1f   :  { %p623_p1 = pnand %p622_p0, %p616_p11 }
  0x21   :  { %626 = shalt.err (!%p623_p1)
}
  0x22   :  { %26 = dma.hbm_to_vmem [thread:$0]  %s802_s0, 256, %s726_s27, [#allocation3], %s679_s13, %s679_s13, %s680_s14  }
  0x23   :  { %s681_s26 = smov [#allocation7]   ;;  %s627_s8 = scalar_lea.hbm %s805_s3, 2048 }
  0x24   :  { %s46_s28 = sshll.u32 %s681_s26, 4  ;;  %p628_p2 = scmp.ne.s32.totalorder %s805_s3, %s627_s8  ;;  %s47_s28 = int_to_ptr.vmem [resolvable:$true] %s46_s28 }
  0x25   :  { %p631_p3 = scmp.lt.u32.totalorder %s627_s8, %s805_s3 }
  0x27   :  { %p633_p4 = pnand %p631_p3, %p628_p2 }
  0x29   :  { %636 = shalt.err (!%p633_p4)
}
  0x2a   :  { %s637_s15 = scalar_lea.vmem %s47_s28, 2048  ;;  %p642_p6 = scmp.lt.s32.totalorder %s47_s28, %s47_s28 }
  0x2b   :  { %p638_p5 = scmp.ne.s32.totalorder %s47_s28, %s637_s15  ;;  %p643_p7 = scmp.lt.s32.totalorder %s637_s15, %s637_s15 }
  0x2d   :  { %p644_p8 = por %p643_p7, %p642_p6 }
  0x2f   :  { %p645_p9 = pnand %p644_p8, %p638_p5 }
  0x31   :  { %648 = shalt.err (!%p645_p9)
}
  0x32   :  { %s682_s0 = smov 64   ;;  %s683_s27 = smov 4  }
  0x33   :  { %52 = dma.hbm_to_vmem [thread:$0]  %s805_s3, 2048, %s47_s28, [#allocation6], %s682_s0, %s682_s0, %s683_s27  }
  0x34   :  { %671 = dma.done.wait [#allocation3], 256  }
  0x35   :  { %672 = vsyncadd [#allocation3], 4294967040 }
  0x36   :  { %673 = dma.done.wait [#allocation6], 4096  }
  0x37   :  { %674 = vsyncadd [#allocation6], 4294963200  ;;  %v684_v0 = vmov 0   ;;  %v539_v1 = vld [vmem:[#allocation5 + $0x4] ss:$8 sps:$4 sm:$0xff]   ;;  %v567_v16 = vld [vmem:[#allocation7 + $0x50] sm:$0xff]   ;;  %v90_v36 = vlaneseq }
  0x38   :  { %212 = vmatprep.mubr.bf16.mxu0 %v684_v0  ;;  %v541_v2 = vld [vmem:[#allocation5] ss:$8 sps:$4 sm:$0xff]   ;;  %180 = vmatprep.subr.bf16.mxu0 %v539_v1  ;;  %v542_v3 = vld [vmem:[#allocation5 + $0x14] ss:$8 sps:$4 sm:$0xff]   ;;  %v544_v4 = vld [vmem:[#allocation5 + $0x10] ss:$8 sps:$4 sm:$0xff]  }
  0x39   :  { %181 = vmatpush1.bf16.msra.mxu0 %v541_v2  ;;  %v545_v5 = vld [vmem:[#allocation5 + $0x24] ss:$8 sps:$4 sm:$0xff]   ;;  %v547_v6 = vld [vmem:[#allocation5 + $0x20] ss:$8 sps:$4 sm:$0xff]   ;;  %v548_v7 = vld [vmem:[#allocation5 + $0x34] ss:$8 sps:$4 sm:$0xff]  }
  0x3a   :  { %182 = vmatprep.subr.bf16.mxu0 %v542_v3  ;;  %v550_v8 = vld [vmem:[#allocation5 + $0x30] ss:$8 sps:$4 sm:$0xff]   ;;  %v551_v9 = vld [vmem:[#allocation5 + $0x44] ss:$8 sps:$4 sm:$0xff]   ;;  %v553_v11 = vld [vmem:[#allocation5 + $0x40] ss:$8 sps:$4 sm:$0xff]  }
  0x3b   :  { %v563_v10 = vld [vmem:[#allocation7 + $0x40] sm:$0xff]   ;;  %v554_v13 = vld [vmem:[#allocation5 + $0x54] ss:$8 sps:$4 sm:$0xff]   ;;  %v565_v14 = vld [vmem:[#allocation7 + $0x48] sm:$0xff]   ;;  %v91_v37 = vshrl.u32 %v90_v36, 7  ;;  %s685_s23 = smov [#allocation8]  }
  0x3c   :  { %v564_v12 = vld [vmem:[#allocation7] sm:$0xff]   ;;  %508 = vmatprep.subr.bf16.mxu1 %v563_v10  ;;  %v566_v15 = vld [vmem:[#allocation7 + $0x8] sm:$0xff]   ;;  %v556_v17 = vld [vmem:[#allocation5 + $0x50] ss:$8 sps:$4 sm:$0xff]   ;;  %s460_s24 = sshll.u32 %s685_s23, 4  ;;  %s461_s24 = int_to_ptr.vmem [resolvable:$true] %s460_s24 }
  0x3d   :  { %183 = vmatpush1.bf16.msra.mxu0 %v544_v4  ;;  %509 = vmatpush3.bf16.msra.mxu1 %v564_v12  ;;  %v557_v18 = vld [vmem:[#allocation5 + $0x64] ss:$8 sps:$4 sm:$0xff]   ;;  %v568_v19 = vld [vmem:[#allocation7 + $0x10] sm:$0xff]   ;;  %v569_v20 = vld [vmem:[#allocation7 + $0x58] sm:$0xff]   ;;  %v92_v38 = vsub.s32 0, %v91_v37  ;;  %v96_v40 = vsub.s32 1, %v91_v37  ;;  %p654_p11 = scmp.lt.s32.totalorder %s461_s24, %s461_s24 }
  0x3e   :  { %184 = vmatprep.subr.bf16.mxu0 %v545_v5  ;;  %510 = vmatprep.subr.bf16.mxu1 %v565_v14  ;;  %v559_v21 = vld [vmem:[#allocation5 + $0x60] ss:$8 sps:$4 sm:$0xff]   ;;  %v560_v22 = vld [vmem:[#allocation5 + $0x74] ss:$8 sps:$4 sm:$0xff]   ;;  %v562_v25 = vld [vmem:[#allocation5 + $0x70] ss:$8 sps:$4 sm:$0xff]  }
  0x3f   :  { %v570_v23 = vld [vmem:[#allocation7 + $0x18] sm:$0xff]   ;;  %v571_v24 = vld [vmem:[#allocation7 + $0x60] sm:$0xff]   ;;  %v69_v26 = vld [vmem:[#allocation2] sm:$0xff]  ;;  %s649_s1 = scalar_lea.vmem %s461_s24, 256 }
  0x40   :  { %v70_v27 = vld [vmem:[#allocation2 + $0x8] sm:$0xff]  ;;  %v572_v28 = vld [vmem:[#allocation7 + $0x20] sm:$0xff]   ;;  %v573_v29 = vld [vmem:[#allocation7 + $0x68] sm:$0xff]   ;;  %p650_p10 = scmp.ne.s32.totalorder %s461_s24, %s649_s1  ;;  %p655_p12 = scmp.lt.s32.totalorder %s649_s1, %s649_s1 }
  0x41   :  { %185 = vmatpush1.bf16.msra.mxu0 %v547_v6  ;;  %511 = vmatpush3.bf16.msra.mxu1 %v566_v15  ;;  %v71_v30 = vpack.c.bf16 %v70_v27, %v69_v26  ;;  %v574_v31 = vld [vmem:[#allocation7 + $0x28] sm:$0xff]   ;;  %v575_v32 = vld [vmem:[#allocation7 + $0x70] sm:$0xff]   ;;  %v577_v34 = vld [vmem:[#allocation7 + $0x78] sm:$0xff]  }
  0x42   :  { %186 = vmatprep.subr.bf16.mxu0 %v548_v7  ;;  %512 = vmatprep.subr.bf16.mxu1 %v567_v16  ;;  %v576_v33 = vld [vmem:[#allocation7 + $0x30] sm:$0xff]   ;;  %v578_v35 = vld [vmem:[#allocation7 + $0x38] sm:$0xff]   ;;  %p656_p13 = por %p655_p12, %p654_p11 }
  0x43   :  { %v88_v39 = vld [vmem:[%s804_s2] sm:$0x3] }
  0x44   :  { %v93_v41 = vrot.slane %v88_v39, %v92_v38  ;;  %v97_v42 = vrot.slane %v88_v39, %v96_v40  ;;  %v489_v58 = vld [vmem:[%s806_s4] ss:$0 sm:$0xff]  ;;  %p657_p0 = pnand %p656_p13, %p650_p10 }
  0x45   :  { %187 = vmatpush1.bf16.msra.mxu0 %v550_v8  ;;  %513 = vmatpush3.bf16.msra.mxu1 %v568_v19 }
  0x46   :  { %188 = vmatprep.subr.bf16.mxu0 %v551_v9  ;;  %514 = vmatprep.subr.bf16.mxu1 %v569_v20 }
  0x49   :  { %189 = vmatpush1.bf16.msra.mxu0 %v553_v11  ;;  %515 = vmatpush3.bf16.msra.mxu1 %v570_v23 }
  0x4a   :  { %190 = vmatprep.subr.bf16.mxu0 %v554_v13  ;;  %516 = vmatprep.subr.bf16.mxu1 %v571_v24  ;;  %v506_v24 = vld [vmem:[%s807_s5] ss:$0 sm:$0xff] }
  0x4d   :  { %191 = vmatpush1.bf16.msra.mxu0 %v556_v17  ;;  %517 = vmatpush3.bf16.msra.mxu1 %v572_v28 }
  0x4e   :  { %192 = vmatprep.subr.bf16.mxu0 %v557_v18  ;;  %518 = vmatprep.subr.bf16.mxu1 %v573_v29 }
  0x51   :  { %193 = vmatpush1.bf16.msra.mxu0 %v559_v21  ;;  %519 = vmatpush3.bf16.msra.mxu1 %v574_v31 }
  0x52   :  { %194 = vmatprep.subr.bf16.mxu0 %v560_v22  ;;  %520 = vmatprep.subr.bf16.mxu1 %v575_v32 }
  0x55   :  { %195 = vmatpush1.bf16.msra.mxu0 %v562_v25  ;;  %521 = vmatpush3.bf16.msra.mxu1 %v576_v33 }
  0x56   :  { %522 = vmatprep.subr.bf16.mxu1 %v577_v34 }
  0x58   :  { %213 = vmatmul.mubr.bf16.vlgmr.msra.gmra.mrb[0].mxu0 %v71_v30 }
  0x59   :  { %523 = vmatpush3.bf16.msra.mxu1 %v578_v35 }
 0x12b   :  { %v214_v43 = vpop.f32.mrb[0].mxu0 }
 0x12c   :  { %v215_v44 = vadd.f32 %v214_v43, %v93_v41  ;;  %v216_v45 = vpop.f32.mrb[1].mxu0 }
 0x12d   :  { %v217_v46 = vadd.f32 %v216_v45, %v97_v42  ;;  %v218_v47 = vpop.f32.mrb[2].mxu0 }
 0x12e   :  { %v219_v48 = vadd.f32 %v218_v47, %v93_v41  ;;  %v220_v49 = vpop.f32.mrb[3].mxu0  ;;  %v223_v51 = vmax.f32 %v215_v44, 0.0 }
 0x12f   :  { %v221_v50 = vadd.f32 %v220_v49, %v97_v42  ;;  %v224_v53 = vmax.f32 %v217_v46, 0.0 }
 0x130   :  { %v225_v52 = vmax.f32 %v219_v48, 0.0 }
 0x131   :  { %v226_v54 = vmax.f32 %v221_v50, 0.0 }
 0x132   :  { %v227_v55 = vpack.c.bf16 %v225_v52, %v223_v51 }
 0x133   :  { %v228_v56 = vpack.c.bf16 %v226_v54, %v224_v53 }
 0x135   :  { %396 = vmatprep.mubr.bf16.mxu1 %v228_v56 }
 0x136   :  { %397 = vmatmul.mubr.bf16.vlgmr.msra.gmra.mrb[0].mxu1 %v227_v55 }
 0x209   :  { %v524_v57 = vpop.f32.mrb[0].mxu1 }
 0x20a   :  { %v525_v59 = vpop.f32.mrb[1].mxu1 }
 0x20b   :  { %v526_v60 = vadd.f32 %v525_v59, %v524_v57  ;;  %v527_v61 = vpop.f32.mrb[2].mxu1 }
 0x20c   :  { %v528_v62 = vpop.f32.mrb[3].mxu1 }
 0x20d   :  { %v399_v63 = vadd.f32 %v526_v60, %v489_v58  ;;  %v529_v0 = vadd.f32 %v528_v62, %v527_v61 }
 0x20f   :  { %v402_v1 = vadd.f32 %v529_v0, %v489_v58  ;;  %v405_v2 = vadd.f32 %v399_v63, %v69_v26  ;;  %v507_v26 = vld [vmem:[%s808_s6] ss:$0 sm:$0xff] }
 0x211   :  { %407 = vadd.xlane.f32.xlu0 %v405_v2  ;;  %v411_v3 = vmul.f32 %v405_v2, %v405_v2  ;;  %v406_v4 = vadd.f32 %v402_v1, %v70_v27 }
 0x213   :  { %413 = vadd.xlane.f32.xlu1 %v411_v3  ;;  %v412_v5 = vmul.f32 %v406_v4, %v406_v4 }
 0x215   :  { %409 = vadd.xlane.f32.xlu0 %v406_v4 }
 0x217   :  { %415 = vadd.xlane.f32.xlu1 %v412_v5 }
 0x29e   :  { %v408_v6 = vpop.xlane.xlu0 %407 }
 0x29f   :  { %v417_v7 = vmul.f32 0.0078125, %v408_v6 }
 0x2a0   :  { %v414_v8 = vpop.xlane.xlu1 %413 }
 0x2a1   :  { %v421_v9 = vmul.f32 %v417_v7, %v417_v7  ;;  %v419_v10 = vmul.f32 0.0078125, %v414_v8  ;;  %v431_v22 = vsub.f32 %v405_v2, %v417_v7 }
 0x2a2   :  { %v410_v11 = vpop.xlane.xlu0 %409 }
 0x2a3   :  { %v423_v12 = vsub.f32 %v419_v10, %v421_v9  ;;  %v418_v13 = vmul.f32 0.0078125, %v410_v11 }
 0x2a4   :  { %v416_v14 = vpop.xlane.xlu1 %415 }
 0x2a5   :  { %v425_v15 = vmax.f32 %v423_v12, 0.0  ;;  %v422_v16 = vmul.f32 %v418_v13, %v418_v13  ;;  %v420_v17 = vmul.f32 0.0078125, %v416_v14  ;;  %v432_v27 = vsub.f32 %v406_v4, %v418_v13 }
 0x2a7   :  { %v427_v18 = vadd.f32 1e-05, %v425_v15  ;;  %v424_v19 = vsub.f32 %v420_v17, %v422_v16 }
 0x2a9   :  { %579 = vrsqrt.f32 %v427_v18  ;;  %v426_v20 = vmax.f32 %v424_v19, 0.0 }
 0x2ab   :  { %v428_v21 = vadd.f32 1e-05, %v426_v20 }
 0x2ad   :  { %581 = vrsqrt.f32 %v428_v21 }
 0x2b3   :  { %v580_v23 = vpop.eup %579 }
 0x2b4   :  { %v433_v25 = vmul.f32 %v580_v23, %v431_v22 }
 0x2b6   :  { %v442_v28 = vmul.f32 %v506_v24, %v433_v25 }
 0x2b7   :  { %v582_v29 = vpop.eup %581 }
 0x2b8   :  { %v434_v30 = vmul.f32 %v582_v29, %v432_v27  ;;  %v451_v31 = vadd.f32 %v507_v26, %v442_v28 }
 0x2ba   :  { %v443_v32 = vmul.f32 %v506_v24, %v434_v30  ;;  %453 = vst [vmem:[#allocation8] sm:$0xff] %v451_v31 }
 0x2bc   :  { %v452_v33 = vadd.f32 %v507_v26, %v443_v32 }
 0x2be   :  { %454 = vst [vmem:[#allocation8 + $0x8] sm:$0xff] %v452_v33 }
 0x2bf   :  { %660 = shalt.err (!%p657_p0)
}
 0x2c0   :  { %s661_s25 = scalar_lea.hbm %s809_s7, 256 }
 0x2c1   :  { %p662_p1 = scmp.ne.s32.totalorder %s809_s7, %s661_s25  ;;  %p665_p2 = scmp.lt.u32.totalorder %s661_s25, %s809_s7 }
 0x2c3   :  { %p667_p3 = pnand %p665_p2, %p662_p1 }
 0x2c5   :  { %670 = shalt.err (!%p667_p3)
}
 0x2c6   :  { %466 = dma.vmem_to_hbm [thread:$0]  %s461_s24, 256, %s809_s7, [#allocation4], %s679_s13, %s679_s13, %s680_s14  }
 0x2c7   :  { %675 = dma.done.wait [#allocation4], 256  }
 0x2c8   :  { %676 = vsyncadd [#allocation4], 4294967040 }
 0x2c9   :  { %470 = vsyncpa [#allocation3], 1 }
 0x2ca   :  { %471 = vsyncpa [#allocation6], 1 }
 0x2cb   :  { %472 = vsyncpa [#allocation4], 1 }

</bundles_post_ra>
